<compile_context>
chip_gen: v7x
topology: tpu7x:2x2x1
jax: 0.10.0
libtpu: 0.0.40
codegen_flags: <defaults>
</compile_context>

<pallas_src>
import functools

import jax
import jax.numpy as jnp
from jax import lax
from jax.experimental import pallas as pl
from jax.experimental.pallas import tpu as pltpu


def _round_up(x, m):
    return ((x + m - 1) // m) * m


def linear_kernel(x_ref, w_ref, b_ref, o_ref, acc_ref, *, tk, k_rem):
    # x_ref: (tm, tk), w_ref: (tn, tk) [PyTorch layout, K last on both]
    # b_ref: (1, tn),  o_ref: (tm, tn), acc_ref: (tm, tn) f32 scratch
    k = pl.program_id(2)
    nk = pl.num_programs(2)

    @pl.when(k == 0)
    def _():
        acc_ref[...] = jnp.zeros_like(acc_ref)

    x = x_ref[...]
    w = w_ref[...]
    if k_rem:
        # K does not divide the K tile: the tail columns of the edge blocks hold
        # garbage (Pallas does not zero OOB reads), so zero BOTH operands past
        # the true K extent on the last k step.
        valid = jnp.where(k == nk - 1, k_rem, tk)
        col = lax.broadcasted_iota(jnp.int32, (1, tk), 1)
        keep = col < valid
        x = jnp.where(keep, x, 0)
        w = jnp.where(keep, w, 0)

    # y_tile += x_tile @ w_tile^T — trans-B contraction, f32 accumulation on the MXU.
    acc_ref[...] += lax.dot_general(
        x, w,
        dimension_numbers=(((1,), (1,)), ((), ())),
        preferred_element_type=jnp.float32,
    )

    @pl.when(k == nk - 1)
    def _():
        # Bias added exactly once, in f32, in the last-k epilogue.
        o_ref[...] = (acc_ref[...] + b_ref[...].astype(jnp.float32)).astype(o_ref.dtype)


def simple_mlp_forward(x, weight, bias, *, tm=1024, tn=512, tk=1024,
                       compute_dtype=jnp.bfloat16):
    """y = x @ weight.T + bias  (nn.Linear forward).

    x:      [B, in_dim]
    weight: [out_dim, in_dim]  (PyTorch convention, NOT transposed)
    bias:   [out_dim]
    compute_dtype: dtype for the MXU operands (default bf16); accumulation is
                   always f32 and the output keeps x's original dtype. Pass
                   None to keep the input dtype on the MXU.
    """
    B, K = x.shape
    N, Kw = weight.shape
    assert Kw == K, "weight last dim must match x last dim"
    assert bias.shape == (N,)
    out_dtype = x.dtype

    if compute_dtype is not None and jnp.dtype(compute_dtype) != x.dtype:
        x = x.astype(compute_dtype)
    if compute_dtype is not None and jnp.dtype(compute_dtype) != weight.dtype:
        weight = weight.astype(compute_dtype)

    # Per-dim tile clamp: a dim that fits in one tile uses its full extent
    # ("equals full dim" satisfies the (8,128) rule with no padding); otherwise
    # use the aligned tile and let Pallas handle the partial edge block.
    tm_b = B if B <= tm else tm      # default tm is a multiple of 16/32 (bf16/8-bit packing)
    tn_b = N if N <= tn else tn      # default tn is a multiple of 256 (v6e MXU friendly)
    tk_b = K if K <= tk else tk      # default tk is a multiple of 128

    gm = pl.cdiv(B, tm_b)
    gn = pl.cdiv(N, tn_b)
    gk = pl.cdiv(K, tk_b)

    # v7x has 2 TensorCores: give a "parallel" axis >= 2 blocks when it is free
    # (splitting N keeps total weight traffic unchanged when grid_i == 1).
    if gm == 1 and gn == 1 and N >= 256:
        half = _round_up(-(-N // 2), 128)
        if pl.cdiv(N, half) >= 2:
            tn_b = half
            gn = pl.cdiv(N, tn_b)

    k_rem = K % tk_b  # 0 when K fits a single tile or divides evenly

    b2d = bias.reshape(1, N)

    # Scoped-VMEM budget from the actual double-buffered footprint; cap at 48 MiB
    # so the config stays safe on v7x (64 MiB physical VMEM) while still letting
    # v5e/v6e run the larger tiles.
    in_bytes = jnp.dtype(x.dtype).itemsize
    out_bytes = jnp.dtype(out_dtype).itemsize
    footprint = (2 * tm_b * tk_b * in_bytes        # x (double-buffered)
                 + 2 * tn_b * tk_b * in_bytes      # weight (double-buffered)
                 + 2 * 8 * tn_b * 4                # bias (sublane-padded)
                 + 2 * tm_b * tn_b * out_bytes     # output (double-buffered)
                 + tm_b * tn_b * 4)                # f32 accumulator scratch
    vmem_limit = int(min(max(footprint + (8 << 20), 32 << 20), 48 << 20))

    kernel = functools.partial(linear_kernel, tk=tk_b, k_rem=k_rem)

    out = pl.pallas_call(
        kernel,
        out_shape=jax.ShapeDtypeStruct((B, N), out_dtype),
        grid_spec=pltpu.PrefetchScalarGridSpec(
            num_scalar_prefetch=0,
            grid=(gm, gn, gk),
            in_specs=[
                pl.BlockSpec((tm_b, tk_b), lambda i, j, k: (i, k)),   # x tile
                pl.BlockSpec((tn_b, tk_b), lambda i, j, k: (j, k)),   # W tile (untransposed)
                pl.BlockSpec((1, tn_b), lambda i, j, k: (0, j)),      # bias tile
            ],
            out_specs=pl.BlockSpec((tm_b, tn_b), lambda i, j, k: (i, j)),
            scratch_shapes=[pltpu.VMEM((tm_b, tn_b), jnp.float32)],
        ),
        compiler_params=pltpu.CompilerParams(
            dimension_semantics=("parallel", "parallel", "arbitrary"),
            vmem_limit_bytes=vmem_limit,
        ),
    )(x, weight, b2d)
    return out


if __name__ == "__main__":
    key = jax.random.PRNGKey(0)

    # --- Small shapes implied by the module: Linear(in_dim, out_dim) on [B, in_dim] ---
    B, in_dim, out_dim = 8, 32, 16
    kx, kw, kb = jax.random.split(key, 3)
    bound = 1.0 / (in_dim ** 0.5)          # PyTorch-style U(-1/sqrt(in), 1/sqrt(in)) init
    weight = jax.random.uniform(kw, (out_dim, in_dim), jnp.float32, -bound, bound)
    bias = jax.random.uniform(kb, (out_dim,), jnp.float32, -bound, bound)
    x = jax.random.normal(kx, (B, in_dim), jnp.float32)
    ref = x @ weight.T + bias

    # Exact path: f32 operands on the MXU.
    out_f32 = jax.block_until_ready(
        simple_mlp_forward(x, weight, bias, compute_dtype=jnp.float32))
    assert out_f32.shape == (B, out_dim)
    assert jnp.allclose(out_f32, ref, atol=1e-5, rtol=1e-5)

    # Default bf16-operand path (f32 accumulation, f32 bias add).
    out_bf16 = jax.block_until_ready(simple_mlp_forward(x, weight, bias))
    assert out_bf16.shape == (B, out_dim)
    assert jnp.allclose(out_bf16, ref, atol=2e-2, rtol=2e-2)

    # --- Larger (still small) check: unaligned dims exercise the in-kernel K-tail
    # mask, partial N edge blocks and the 2-block parallel-N split. Grid (1, 2, 2).
    B2, in2, out2 = 136, 1088, 272
    k2x, k2w, k2b = jax.random.split(jax.random.PRNGKey(1), 3)
    bound2 = 1.0 / (in2 ** 0.5)
    weight2 = jax.random.uniform(k2w, (out2, in2), jnp.float32, -bound2, bound2)
    bias2 = jax.random.uniform(k2b, (out2,), jnp.float32, -bound2, bound2)
    x2 = jax.random.normal(k2x, (B2, in2), jnp.float32)

    out2_res = jax.block_until_ready(simple_mlp_forward(x2, weight2, bias2))
    ref2 = x2 @ weight2.T + bias2
    assert out2_res.shape == (B2, out2)
    assert jnp.allclose(out2_res, ref2, atol=2e-2, rtol=2e-2)

    print("KERNEL_OK")
</pallas_src>

<mosaic_0001>
module attributes {stable_mosaic.version = 11 : i64} {
  func.func @linear_kernel(%arg0: i32, %arg1: i32, %arg2: i32, %arg3: memref<8x32xf32, #tpu.memory_space<vmem>>, %arg4: memref<16x32xf32, #tpu.memory_space<vmem>>, %arg5: memref<1x16xf32, #tpu.memory_space<vmem>>, %arg6: memref<8x16xf32, #tpu.memory_space<vmem>>, %arg7: memref<8x16xf32, #tpu.memory_space<vmem>>) attributes {dimension_semantics = [#tpu.dimension_semantics<parallel>, #tpu.dimension_semantics<parallel>, #tpu.dimension_semantics<arbitrary>], iteration_bounds = array<i64: 1, 1, 1>, scalar_prefetch = 0 : i64, scratch_operands = 1 : i64, tpu.core_type = #tpu.core_type<tc>, window_params = [{transform_indices = @transform_0, window_bounds = array<i64: 8, 32>}, {transform_indices = @transform_1, window_bounds = array<i64: 16, 32>}, {transform_indices = @transform_2, window_bounds = array<i64: 1, 16>}, {transform_indices = @transform_3, window_bounds = array<i64: 8, 16>}]} {
    %c0_i32 = arith.constant 0 : i32
    %0 = arith.cmpi eq, %arg2, %c0_i32 : i32
    %1 = arith.extui %0 : i1 to i32
    %c0_i32_0 = arith.constant 0 : i32
    %2 = arith.cmpi ne, %1, %c0_i32_0 : i32
    scf.if %2 {
      %cst_10 = arith.constant 0.000000e+00 : f32
      %12 = vector.broadcast %cst_10 : f32 to vector<8x16xf32>
      %c0_11 = arith.constant 0 : index
      %c0_12 = arith.constant 0 : index
      %13 = vector.load %arg7[%c0_11, %c0_12] : memref<8x16xf32, #tpu.memory_space<vmem>>, vector<8x16xf32>
      tpu.vector_store %arg7[%c0_11, %c0_12], %12 {strides = array<i32>} : memref<8x16xf32, #tpu.memory_space<vmem>>, vector<8x16xf32>,
    } else {
    }
    %c0 = arith.constant 0 : index
    %c0_1 = arith.constant 0 : index
    %3 = vector.load %arg3[%c0, %c0_1] : memref<8x32xf32, #tpu.memory_space<vmem>>, vector<8x32xf32>
    %c0_2 = arith.constant 0 : index
    %c0_3 = arith.constant 0 : index
    %4 = vector.load %arg4[%c0_2, %c0_3] : memref<16x32xf32, #tpu.memory_space<vmem>>, vector<16x32xf32>
    %c0_4 = arith.constant 0 : index
    %c0_5 = arith.constant 0 : index
    %5 = vector.load %arg7[%c0_4, %c0_5] : memref<8x16xf32, #tpu.memory_space<vmem>>, vector<8x16xf32>
    %cst = arith.constant dense<0.000000e+00> : vector<8x16xf32>
    %6 = tpu.matmul %3, %4, %cst {dimension_numbers = #tpu.dot_dimension_numbers<[1], [1], [0], [0], [0, 0, 1, 0], [], []>} : vector<8x32xf32>, vector<16x32xf32>, vector<8x16xf32> -> vector<8x16xf32>
    %7 = arith.addf %5, %6 : vector<8x16xf32>
    %c0_6 = arith.constant 0 : index
    %c0_7 = arith.constant 0 : index
    %8 = vector.load %arg7[%c0_6, %c0_7] : memref<8x16xf32, #tpu.memory_space<vmem>>, vector<8x16xf32>
    tpu.vector_store %arg7[%c0_6, %c0_7], %7 {strides = array<i32>} : memref<8x16xf32, #tpu.memory_space<vmem>>, vector<8x16xf32>,
    %c0_i32_8 = arith.constant 0 : i32
    %9 = arith.cmpi eq, %arg2, %c0_i32_8 : i32
    %10 = arith.extui %9 : i1 to i32
    %c0_i32_9 = arith.constant 0 : i32
    %11 = arith.cmpi ne, %10, %c0_i32_9 : i32
    scf.if %11 {
      %c0_10 = arith.constant 0 : index
      %c0_11 = arith.constant 0 : index
      %12 = vector.load %arg7[%c0_10, %c0_11] : memref<8x16xf32, #tpu.memory_space<vmem>>, vector<8x16xf32>
      %c0_12 = arith.constant 0 : index
      %c0_13 = arith.constant 0 : index
      %13 = vector.load %arg5[%c0_12, %c0_13] : memref<1x16xf32, #tpu.memory_space<vmem>>, vector<1x16xf32>
      %14 = vector.broadcast %13 : vector<1x16xf32> to vector<8x16xf32>
      %15 = arith.addf %12, %14 : vector<8x16xf32>
      %c0_14 = arith.constant 0 : index
      %c0_15 = arith.constant 0 : index
      %16 = vector.load %arg6[%c0_14, %c0_15] : memref<8x16xf32, #tpu.memory_space<vmem>>, vector<8x16xf32>
      tpu.vector_store %arg6[%c0_14, %c0_15], %15 {strides = array<i32>} : memref<8x16xf32, #tpu.memory_space<vmem>>, vector<8x16xf32>,
    } else {
    }
    return
  }
  func.func @transform_0(%arg0: i32, %arg1: i32, %arg2: i32) -> (i32, i32) {
    %c0_i32 = arith.constant 0 : i32
    return %arg0, %arg2 : i32, i32
  }
  func.func @transform_1(%arg0: i32, %arg1: i32, %arg2: i32) -> (i32, i32) {
    %c0_i32 = arith.constant 0 : i32
    return %arg1, %arg2 : i32, i32
  }
  func.func @transform_2(%arg0: i32, %arg1: i32, %arg2: i32) -> (i32, i32) {
    %c0_i32 = arith.constant 0 : i32
    %c0_i32_0 = arith.constant 0 : i32
    return %c0_i32, %arg1 : i32, i32
  }
  func.func @transform_3(%arg0: i32, %arg1: i32, %arg2: i32) -> (i32, i32) {
    %c0_i32 = arith.constant 0 : i32
    return %arg0, %arg1 : i32, i32
  }
}

</mosaic_0001>

<bundles_post_ra>
// kernel: tpu_custom_call.1
= control target key start
LH: loop header
LB: loop body
LE: loop exit
PB: predicated region body
PF: predicated region fallthrough
CT: control target
= control target key end

     0   :  { %8 = vsyncpa [#allocation4], 0  ;;  %s338_s0 = inlined_call_operand.hbm [shape: f32[8,32], index: 0, kind: input, shape index: {}]   ;;  %s339_s1 = inlined_call_operand.hbm [shape: f32[16,32], index: 1, kind: input, shape index: {}]   ;;  %s340_s2 = inlined_call_operand.vmem [shape: f32[1,16], index: 2, kind: input, shape index: {}]   ;;  %s341_s3 = inlined_call_operand.hbm [shape: f32[8,16], index: 3, kind: output, shape index: {}]  }
   0x1   :  { %9 = vsyncpa [#allocation7], 0 }
   0x2   :  { %10 = vsyncpa [#allocation5], 0  ;;  %s261_s12 = smov [#allocation3]   ;;  %s262_s14 = smov [#allocation6]  }
   0x3   :  { %s17_s13 = sshll.u32 %s261_s12, 4  ;;  %s26_s15 = sshll.u32 %s262_s14, 4  ;;  %s18_s13 = int_to_ptr.vmem [resolvable:$true] %s17_s13  ;;  %s289_s15 = int_to_ptr.vmem [resolvable:$true] %s26_s15 }
   0x4   :  { %s189_s18 = scalar_lea.hbm %s338_s0, 128 }
   0x5   :  { %p190_p0 = scmp.ne.s32.totalorder %s338_s0, %s189_s18  ;;  %p193_p1 = scmp.lt.u32.totalorder %s189_s18, %s338_s0 }
   0x7   :  { %p195_p2 = pnand %p193_p1, %p190_p0 }
   0x9   :  { %198 = shalt.err (!%p195_p2)
}
   0xa   :  { %s199_s23 = scalar_lea.vmem %s18_s13, 128  ;;  %p204_p4 = scmp.lt.s32.totalorder %s18_s13, %s18_s13 }
   0xb   :  { %p200_p3 = scmp.ne.s32.totalorder %s18_s13, %s199_s23  ;;  %p205_p5 = scmp.lt.s32.totalorder %s199_s23, %s199_s23 }
   0xd   :  { %p206_p6 = por %p205_p5, %p204_p4 }
   0xf   :  { %p207_p7 = pnand %p206_p6, %p200_p3 }
  0x11   :  { %210 = shalt.err (!%p207_p7)
}
  0x12   :  { %20 = dma.hbm_to_vmem [thread:$0]  %s338_s0, 128, %s18_s13, [#allocation4]  }
  0x13   :  { %s211_s28 = scalar_lea.hbm %s339_s1, 256 }
  0x14   :  { %p212_p8 = scmp.ne.s32.totalorder %s339_s1, %s211_s28  ;;  %p215_p9 = scmp.lt.u32.totalorder %s211_s28, %s339_s1 }
  0x16   :  { %p217_p10 = pnand %p215_p9, %p212_p8 }
  0x18   :  { %220 = shalt.err (!%p217_p10)
}
  0x19   :  { %s221_s6 = scalar_lea.vmem %s289_s15, 256  ;;  %p226_p12 = scmp.lt.s32.totalorder %s289_s15, %s289_s15 }
  0x1a   :  { %p222_p11 = scmp.ne.s32.totalorder %s289_s15, %s221_s6  ;;  %p227_p13 = scmp.lt.s32.totalorder %s221_s6, %s221_s6 }
  0x1c   :  { %p228_p0 = por %p227_p13, %p226_p12 }
  0x1e   :  { %p229_p1 = pnand %p228_p0, %p222_p11 }
  0x20   :  { %232 = shalt.err (!%p229_p1)
}
  0x21   :  { %s263_s0 = smov 128   ;;  %s264_s7 = smov 8  }
  0x22   :  { %32 = dma.hbm_to_vmem [thread:$0]  %s339_s1, 256, %s289_s15, [#allocation7], %s263_s0, %s263_s0, %s264_s7  }
  0x23   :  { %255 = dma.done.wait [#allocation4], 128  }
  0x24   :  { %256 = vsyncadd [#allocation4], 4294967168 }
  0x25   :  { %257 = dma.done.wait [#allocation7], 256  }
  0x26   :  { %258 = vsyncadd [#allocation7], 4294967040  ;;  %vm45_vm0 = vcmask 130048   ;;  %v265_v0 = vmov 0.0|0.0   ;;  %v266_v1 = vmov 0.0   ;;  %vm267_vm1 = vmmov 0  }
  0x27   :  { %177 = vmatprep.subr.bf16.mxu0 %v265_v0  ;;  %46 = vst.msk [vmem:[#allocation2] sm:$0xff] %vm45_vm0, %v266_v1  ;;  %174 = vmatprep.mubr.msk.f32.mxu0 %vm267_vm1, %v266_v1  ;;  %vm51_vm2 = vcmask 261120   ;;  %v48_v2 = vld [vmem:[#allocation6] sm:$0xff]  ;;  %v49_v3 = vld [vmem:[#allocation6 + $0x8] sm:$0xff]  ;;  %v47_v5 = vld [vmem:[#allocation3] sm:$0xff]  ;;  %s268_s11 = smov [#allocation8]  }
  0x28   :  { %vm179_vm3 = vmpackc.low %vm51_vm2, %vm51_vm2  ;;  %v178_v4 = vpack.c.bf16 %v49_v3, %v48_v2  ;;  %v166_v10 = vld [vmem:[%s340_s2] ss:$0 sm:$0xff]  ;;  %s153_s12 = sshll.u32 %s268_s11, 4  ;;  %s154_s12 = int_to_ptr.vmem [resolvable:$true] %s153_s12 }
  0x29   :  { %s233_s13 = scalar_lea.vmem %s154_s12, 128  ;;  %p238_p3 = scmp.lt.s32.totalorder %s154_s12, %s154_s12 }
  0x2a   :  { %180 = vmatpush3.bf16.xpose.msk.msra.mxu0 %vm179_vm3, %v178_v4  ;;  %p234_p2 = scmp.ne.s32.totalorder %s154_s12, %s233_s13  ;;  %p239_p4 = scmp.lt.s32.totalorder %s233_s13, %s233_s13 }
  0x2c   :  { %p240_p5 = por %p239_p4, %p238_p3 }
  0x2e   :  { %v50_v6 = vld [vmem:[#allocation2] sm:$0xff]  ;;  %p241_p6 = pnand %p240_p5, %p234_p2 }
  0x31   :  { %175 = vmatmul.mubr.msk.f32.vlgmr.msra.gmra.mrb[0].mxu0 %vm51_vm2, %v47_v5 }
 0x104   :  { %v127_v7 = vpop.f32.mrb[0].mxu0 }
 0x105   :  { %v131_v8 = vadd.f32 %v127_v7, %v50_v6  ;;  %v176_v9 = vpop.f32.mrb[1].mxu0 }
 0x107   :  { %133 = vst.msk [vmem:[#allocation2] sm:$0xff] %vm45_vm0, %v131_v8 }
 0x10e   :  { %v137_v11 = vld [vmem:[#allocation2] sm:$0xff] }
 0x10f   :  { %v145_v12 = vadd.f32 %v166_v10, %v137_v11 }
 0x111   :  { %146 = vst.msk [vmem:[#allocation8] sm:$0xff] %vm45_vm0, %v145_v12 }
 0x112   :  { %244 = shalt.err (!%p241_p6)
}
 0x113   :  { %s245_s16 = scalar_lea.hbm %s341_s3, 128 }
 0x114   :  { %p246_p7 = scmp.ne.s32.totalorder %s341_s3, %s245_s16  ;;  %p249_p8 = scmp.lt.u32.totalorder %s245_s16, %s341_s3 }
 0x116   :  { %p251_p9 = pnand %p249_p8, %p246_p7 }
 0x118   :  { %254 = shalt.err (!%p251_p9)
}
 0x119   :  { %156 = dma.vmem_to_hbm [thread:$0]  %s154_s12, 128, %s341_s3, [#allocation5]  }
 0x11a   :  { %259 = dma.done.wait [#allocation5], 128  }
 0x11b   :  { %260 = vsyncadd [#allocation5], 4294967168 }
 0x11c   :  { %160 = vsyncpa [#allocation4], 1 }
 0x11d   :  { %161 = vsyncpa [#allocation7], 1 }
 0x11e   :  { %162 = vsyncpa [#allocation5], 1 }

</bundles_post_ra>
